<compile_context>
chip_gen: v6e
topology: v6e:2x2x1
jax: 0.10.0
libtpu: 0.0.40
codegen_flags: <defaults>
</compile_context>

<pallas_src>
import numpy as np

import jax
import jax.numpy as jnp
from jax.experimental import pallas as pl
from jax.experimental.pallas import tpu as pltpu


# ----------------------------------------------------------------------------
# Host-side helpers (all static, computed once per shape)
# ----------------------------------------------------------------------------
def _normalize_padding(padding):
    """Return (left, right, top, bottom) like torch's 2d padding convention."""
    if isinstance(padding, int):
        return (padding, padding, padding, padding)
    padding = tuple(int(p) for p in padding)
    assert len(padding) == 4, "padding must be an int or a 4-tuple (l, r, t, b)"
    return padding


def _pad_indices(size, pad_before, pad_after, mode):
    """Source index for every output position along one axis (-1 = fill)."""
    idx = []
    for o in range(size + pad_before + pad_after):
        i = o - pad_before
        if 0 <= i < size:
            idx.append(i)
        elif mode in ("zeros", "constant"):
            idx.append(-1)
        elif mode == "replication":
            idx.append(min(max(i, 0), size - 1))
        elif mode == "reflection":
            # PyTorch ReflectionPad2d: reflect without repeating the edge.
            assert pad_before < size and pad_after < size, (
                "reflection padding must be smaller than the input size")
            idx.append(-i if i < 0 else 2 * (size - 1) - i)
        else:
            raise ValueError(f"unsupported padding mode: {mode}")
    return idx


def _selection_matrices(H, W, pads, mode, value):
    """Build S_h (Ho,H), S_w (W,Wo) one-hot selectors and the fill mask (Ho,Wo)."""
    left, right, top, bottom = pads
    idx_h = _pad_indices(H, top, bottom, mode)
    idx_w = _pad_indices(W, left, right, mode)
    Ho, Wo = len(idx_h), len(idx_w)

    S_h = np.zeros((Ho, H), np.float32)
    for o, i in enumerate(idx_h):
        if i >= 0:
            S_h[o, i] = 1.0
    S_w = np.zeros((W, Wo), np.float32)
    for o, i in enumerate(idx_w):
        if i >= 0:
            S_w[i, o] = 1.0

    fill = float(value) if mode == "constant" else 0.0
    m = np.zeros((Ho, Wo), np.float32)
    if fill != 0.0:
        row_pad = np.array([i < 0 for i in idx_h], dtype=bool)
        col_pad = np.array([i < 0 for i in idx_w], dtype=bool)
        m[row_pad[:, None] | col_pad[None, :]] = fill
    return S_h, S_w, m, Ho, Wo


def _choose_plane_tile(nc, max_tile=8):
    """Planes per grid step: amortize per-step overhead, keep grid >= 2 when possible."""
    candidates = [t for t in range(1, min(nc, max_tile) + 1) if nc % t == 0]
    good = [t for t in candidates if nc // t >= 2]
    return max(good) if good else max(candidates)


# ----------------------------------------------------------------------------
# Kernel
# ----------------------------------------------------------------------------
def _pad_plane_kernel(x_ref, sh_ref, sw_ref, m_ref, o_ref):
    # x_ref: (T, H, W)   sh_ref: (Ho, H)   sw_ref: (W, Wo)
    # m_ref: (Ho, Wo)    o_ref: (T, Ho, Wo)
    sh = sh_ref[...]
    sw = sw_ref[...]
    m = m_ref[...]
    num_planes = x_ref.shape[0]  # static
    for t in range(num_planes):  # static unroll over planes in this block
        x = x_ref[t].astype(jnp.float32)                              # (H, W)
        y = jnp.dot(x, sw, preferred_element_type=jnp.float32)        # (H, Wo)
        z = jnp.dot(sh, y, preferred_element_type=jnp.float32)        # (Ho, Wo)
        o_ref[t] = (z + m).astype(o_ref.dtype)


# ----------------------------------------------------------------------------
# Wrapper
# ----------------------------------------------------------------------------
def pad2d_pallas(x, padding, mode="zeros", value=0.0):
    """2-D padding of an NCHW tensor via a Pallas TPU kernel."""
    pads = _normalize_padding(padding)
    N, C, H, W = x.shape
    S_h, S_w, m, Ho, Wo = _selection_matrices(H, W, pads, mode, value)

    nc = N * C
    x_nc = x.reshape(nc, H, W)
    tc = _choose_plane_tile(nc)
    grid = (nc // tc,)

    itemsize = jnp.dtype(x.dtype).itemsize
    cost = pl.CostEstimate(
        flops=2 * nc * (H * W * Wo + H * Wo * Ho),
        transcendentals=0,
        bytes_accessed=nc * (H * W + Ho * Wo) * itemsize
        + (S_h.size + S_w.size + m.size) * 4,
    )

    out = pl.pallas_call(
        _pad_plane_kernel,
        out_shape=jax.ShapeDtypeStruct((nc, Ho, Wo), x.dtype),
        grid=grid,
        in_specs=[
            pl.BlockSpec((tc, H, W), lambda i: (i, 0, 0)),
            pl.BlockSpec((Ho, H), lambda i: (0, 0)),
            pl.BlockSpec((W, Wo), lambda i: (0, 0)),
            pl.BlockSpec((Ho, Wo), lambda i: (0, 0)),
        ],
        out_specs=pl.BlockSpec((tc, Ho, Wo), lambda i: (i, 0, 0)),
        compiler_params=pltpu.CompilerParams(
            dimension_semantics=("parallel",),
        ),
        cost_estimate=cost,
    )(x_nc, jnp.asarray(S_h), jnp.asarray(S_w), jnp.asarray(m))

    return out.reshape(N, C, Ho, Wo)


class Padding:
    """Mirror of the PyTorch Padding wrapper (Zero/Constant/Reflection/Replication Pad2d)."""

    def __init__(self, padding, padding_mode="zeros", value=0):
        assert padding_mode in ("zeros", "constant", "reflection", "replication")
        self.padding = _normalize_padding(padding)
        self.mode = padding_mode
        self.value = value

    def __call__(self, x):
        return pad2d_pallas(x, self.padding, self.mode, self.value)


# ----------------------------------------------------------------------------
# Demo / correctness check
# ----------------------------------------------------------------------------
if __name__ == "__main__":
    key = jax.random.PRNGKey(0)
    x = jax.random.normal(key, (2, 4, 16, 16), dtype=jnp.float32)

    # zeros (default mode in the PyTorch module)
    y = jax.block_until_ready(Padding(1, "zeros")(x))
    ref = jnp.pad(x, ((0, 0), (0, 0), (1, 1), (1, 1)))
    assert y.shape == (2, 4, 18, 18)
    assert jnp.allclose(y, ref, atol=1e-6)

    # reflection, asymmetric padding (left, right, top, bottom) = (2, 1, 1, 2)
    y_r = jax.block_until_ready(Padding((2, 1, 1, 2), "reflection")(x))
    ref_r = jnp.pad(x, ((0, 0), (0, 0), (1, 2), (2, 1)), mode="reflect")
    assert jnp.allclose(y_r, ref_r, atol=1e-6)

    # replication
    y_p = jax.block_until_ready(Padding(2, "replication")(x))
    ref_p = jnp.pad(x, ((0, 0), (0, 0), (2, 2), (2, 2)), mode="edge")
    assert jnp.allclose(y_p, ref_p, atol=1e-6)

    # constant with non-zero value
    y_c = jax.block_until_ready(Padding(1, "constant", value=0.5)(x))
    ref_c = jnp.pad(x, ((0, 0), (0, 0), (1, 1), (1, 1)), constant_values=0.5)
    assert jnp.allclose(y_c, ref_c, atol=1e-6)

    print("KERNEL_OK")
</pallas_src>

<mosaic_0001>
module attributes {stable_mosaic.version = 11 : i64} {
  func.func @_pad_plane_kernel(%arg0: i32, %arg1: memref<4x16x16xf32, #tpu.memory_space<vmem>>, %arg2: memref<18x16xf32, #tpu.memory_space<vmem>>, %arg3: memref<16x18xf32, #tpu.memory_space<vmem>>, %arg4: memref<18x18xf32, #tpu.memory_space<vmem>>, %arg5: memref<4x18x18xf32, #tpu.memory_space<vmem>>) attributes {dimension_semantics = [#tpu.dimension_semantics<parallel>], iteration_bounds = array<i64: 2>, scalar_prefetch = 0 : i64, scratch_operands = 0 : i64, tpu.core_type = #tpu.core_type<tc>, window_params = [{transform_indices = @transform_0, window_bounds = array<i64: 4, 16, 16>}, {pipeline_mode = #tpu.pipeline_mode<synchronous>, transform_indices = @transform_1, window_bounds = array<i64: 18, 16>}, {pipeline_mode = #tpu.pipeline_mode<synchronous>, transform_indices = @transform_2, window_bounds = array<i64: 16, 18>}, {pipeline_mode = #tpu.pipeline_mode<synchronous>, transform_indices = @transform_3, window_bounds = array<i64: 18, 18>}, {transform_indices = @transform_4, window_bounds = array<i64: 4, 18, 18>}]} {
    %c0 = arith.constant 0 : index
    %c0_0 = arith.constant 0 : index
    %0 = vector.load %arg2[%c0, %c0_0] : memref<18x16xf32, #tpu.memory_space<vmem>>, vector<18x16xf32>
    %c0_1 = arith.constant 0 : index
    %c0_2 = arith.constant 0 : index
    %1 = vector.load %arg3[%c0_1, %c0_2] : memref<16x18xf32, #tpu.memory_space<vmem>>, vector<16x18xf32>
    %c0_3 = arith.constant 0 : index
    %c0_4 = arith.constant 0 : index
    %2 = vector.load %arg4[%c0_3, %c0_4] : memref<18x18xf32, #tpu.memory_space<vmem>>, vector<18x18xf32>
    %c0_5 = arith.constant 0 : index
    %c0_6 = arith.constant 0 : index
    %c0_7 = arith.constant 0 : index
    %3 = vector.load %arg1[%c0_5, %c0_6, %c0_7] : memref<4x16x16xf32, #tpu.memory_space<vmem>>, vector<1x16x16xf32>
    %4 = vector.shape_cast %3 : vector<1x16x16xf32> to vector<16x16xf32>
    %cst = arith.constant dense<0.000000e+00> : vector<16x18xf32>
    %5 = tpu.matmul %4, %1, %cst {dimension_numbers = #tpu.dot_dimension_numbers<[1], [0], [0], [1], [0, 0, 1, 1], [], []>} : vector<16x16xf32>, vector<16x18xf32>, vector<16x18xf32> -> vector<16x18xf32>
    %cst_8 = arith.constant dense<0.000000e+00> : vector<18x18xf32>
    %6 = tpu.matmul %0, %5, %cst_8 {dimension_numbers = #tpu.dot_dimension_numbers<[1], [0], [0], [1], [0, 0, 1, 1], [], []>} : vector<18x16xf32>, vector<16x18xf32>, vector<18x18xf32> -> vector<18x18xf32>
    %7 = arith.addf %6, %2 : vector<18x18xf32>
    %c0_9 = arith.constant 0 : index
    %c0_10 = arith.constant 0 : index
    %c0_11 = arith.constant 0 : index
    %8 = vector.load %arg5[%c0_9, %c0_10, %c0_11] : memref<4x18x18xf32, #tpu.memory_space<vmem>>, vector<1x18x18xf32>
    %9 = vector.shape_cast %8 : vector<1x18x18xf32> to vector<18x18xf32>
    %10 = vector.shape_cast %7 : vector<18x18xf32> to vector<1x18x18xf32>
    tpu.vector_store %arg5[%c0_9, %c0_10, %c0_11], %10 {strides = array<i32>} : memref<4x18x18xf32, #tpu.memory_space<vmem>>, vector<1x18x18xf32>,
    %c1 = arith.constant 1 : index
    %c0_12 = arith.constant 0 : index
    %c0_13 = arith.constant 0 : index
    %11 = vector.load %arg1[%c1, %c0_12, %c0_13] : memref<4x16x16xf32, #tpu.memory_space<vmem>>, vector<1x16x16xf32>
    %12 = vector.shape_cast %11 : vector<1x16x16xf32> to vector<16x16xf32>
    %cst_14 = arith.constant dense<0.000000e+00> : vector<16x18xf32>
    %13 = tpu.matmul %12, %1, %cst_14 {dimension_numbers = #tpu.dot_dimension_numbers<[1], [0], [0], [1], [0, 0, 1, 1], [], []>} : vector<16x16xf32>, vector<16x18xf32>, vector<16x18xf32> -> vector<16x18xf32>
    %cst_15 = arith.constant dense<0.000000e+00> : vector<18x18xf32>
    %14 = tpu.matmul %0, %13, %cst_15 {dimension_numbers = #tpu.dot_dimension_numbers<[1], [0], [0], [1], [0, 0, 1, 1], [], []>} : vector<18x16xf32>, vector<16x18xf32>, vector<18x18xf32> -> vector<18x18xf32>
    %15 = arith.addf %14, %2 : vector<18x18xf32>
    %c1_16 = arith.constant 1 : index
    %c0_17 = arith.constant 0 : index
    %c0_18 = arith.constant 0 : index
    %16 = vector.load %arg5[%c1_16, %c0_17, %c0_18] : memref<4x18x18xf32, #tpu.memory_space<vmem>>, vector<1x18x18xf32>
    %17 = vector.shape_cast %16 : vector<1x18x18xf32> to vector<18x18xf32>
    %18 = vector.shape_cast %15 : vector<18x18xf32> to vector<1x18x18xf32>
    tpu.vector_store %arg5[%c1_16, %c0_17, %c0_18], %18 {strides = array<i32>} : memref<4x18x18xf32, #tpu.memory_space<vmem>>, vector<1x18x18xf32>,
    %c2 = arith.constant 2 : index
    %c0_19 = arith.constant 0 : index
    %c0_20 = arith.constant 0 : index
    %19 = vector.load %arg1[%c2, %c0_19, %c0_20] : memref<4x16x16xf32, #tpu.memory_space<vmem>>, vector<1x16x16xf32>
    %20 = vector.shape_cast %19 : vector<1x16x16xf32> to vector<16x16xf32>
    %cst_21 = arith.constant dense<0.000000e+00> : vector<16x18xf32>
    %21 = tpu.matmul %20, %1, %cst_21 {dimension_numbers = #tpu.dot_dimension_numbers<[1], [0], [0], [1], [0, 0, 1, 1], [], []>} : vector<16x16xf32>, vector<16x18xf32>, vector<16x18xf32> -> vector<16x18xf32>
    %cst_22 = arith.constant dense<0.000000e+00> : vector<18x18xf32>
    %22 = tpu.matmul %0, %21, %cst_22 {dimension_numbers = #tpu.dot_dimension_numbers<[1], [0], [0], [1], [0, 0, 1, 1], [], []>} : vector<18x16xf32>, vector<16x18xf32>, vector<18x18xf32> -> vector<18x18xf32>
    %23 = arith.addf %22, %2 : vector<18x18xf32>
    %c2_23 = arith.constant 2 : index
    %c0_24 = arith.constant 0 : index
    %c0_25 = arith.constant 0 : index
    %24 = vector.load %arg5[%c2_23, %c0_24, %c0_25] : memref<4x18x18xf32, #tpu.memory_space<vmem>>, vector<1x18x18xf32>
    %25 = vector.shape_cast %24 : vector<1x18x18xf32> to vector<18x18xf32>
    %26 = vector.shape_cast %23 : vector<18x18xf32> to vector<1x18x18xf32>
    tpu.vector_store %arg5[%c2_23, %c0_24, %c0_25], %26 {strides = array<i32>} : memref<4x18x18xf32, #tpu.memory_space<vmem>>, vector<1x18x18xf32>,
    %c3 = arith.constant 3 : index
    %c0_26 = arith.constant 0 : index
    %c0_27 = arith.constant 0 : index
    %27 = vector.load %arg1[%c3, %c0_26, %c0_27] : memref<4x16x16xf32, #tpu.memory_space<vmem>>, vector<1x16x16xf32>
    %28 = vector.shape_cast %27 : vector<1x16x16xf32> to vector<16x16xf32>
    %cst_28 = arith.constant dense<0.000000e+00> : vector<16x18xf32>
    %29 = tpu.matmul %28, %1, %cst_28 {dimension_numbers = #tpu.dot_dimension_numbers<[1], [0], [0], [1], [0, 0, 1, 1], [], []>} : vector<16x16xf32>, vector<16x18xf32>, vector<16x18xf32> -> vector<16x18xf32>
    %cst_29 = arith.constant dense<0.000000e+00> : vector<18x18xf32>
    %30 = tpu.matmul %0, %29, %cst_29 {dimension_numbers = #tpu.dot_dimension_numbers<[1], [0], [0], [1], [0, 0, 1, 1], [], []>} : vector<18x16xf32>, vector<16x18xf32>, vector<18x18xf32> -> vector<18x18xf32>
    %31 = arith.addf %30, %2 : vector<18x18xf32>
    %c3_30 = arith.constant 3 : index
    %c0_31 = arith.constant 0 : index
    %c0_32 = arith.constant 0 : index
    %32 = vector.load %arg5[%c3_30, %c0_31, %c0_32] : memref<4x18x18xf32, #tpu.memory_space<vmem>>, vector<1x18x18xf32>
    %33 = vector.shape_cast %32 : vector<1x18x18xf32> to vector<18x18xf32>
    %34 = vector.shape_cast %31 : vector<18x18xf32> to vector<1x18x18xf32>
    tpu.vector_store %arg5[%c3_30, %c0_31, %c0_32], %34 {strides = array<i32>} : memref<4x18x18xf32, #tpu.memory_space<vmem>>, vector<1x18x18xf32>,
    return
  }
  func.func @transform_0(%arg0: i32) -> (i32, i32, i32) {
    %c0_i32 = arith.constant 0 : i32
    %c0_i32_0 = arith.constant 0 : i32
    %c0_i32_1 = arith.constant 0 : i32
    return %arg0, %c0_i32, %c0_i32_0 : i32, i32, i32
  }
  func.func @transform_1(%arg0: i32) -> (i32, i32) {
    %c0_i32 = arith.constant 0 : i32
    %c0_i32_0 = arith.constant 0 : i32
    %c0_i32_1 = arith.constant 0 : i32
    return %c0_i32, %c0_i32_0 : i32, i32
  }
  func.func @transform_2(%arg0: i32) -> (i32, i32) {
    %c0_i32 = arith.constant 0 : i32
    %c0_i32_0 = arith.constant 0 : i32
    %c0_i32_1 = arith.constant 0 : i32
    return %c0_i32, %c0_i32_0 : i32, i32
  }
  func.func @transform_3(%arg0: i32) -> (i32, i32) {
    %c0_i32 = arith.constant 0 : i32
    %c0_i32_0 = arith.constant 0 : i32
    %c0_i32_1 = arith.constant 0 : i32
    return %c0_i32, %c0_i32_0 : i32, i32
  }
  func.func @transform_4(%arg0: i32) -> (i32, i32, i32) {
    %c0_i32 = arith.constant 0 : i32
    %c0_i32_0 = arith.constant 0 : i32
    %c0_i32_1 = arith.constant 0 : i32
    return %arg0, %c0_i32, %c0_i32_0 : i32, i32, i32
  }
}

</mosaic_0001>

<bundles_post_ra>
// kernel: tpu_custom_call.1
= control target key start
LH: loop header
LB: loop body
LE: loop exit
PB: predicated region body
PF: predicated region fallthrough
CT: control target
= control target key end

     0   :  { %9 = vsyncpa [#allocation3], 0  ;;  %s1517_s0 = inlined_call_operand.hbm [shape: f32[8,16,16], index: 0, kind: input, shape index: {}]   ;;  %s1518_s1 = inlined_call_operand.vmem [shape: f32[18,16], index: 1, kind: input, shape index: {}]   ;;  %s1519_s2 = inlined_call_operand.vmem [shape: f32[16,18], index: 2, kind: input, shape index: {}]   ;;  %s1520_s3 = inlined_call_operand.vmem [shape: f32[18,18], index: 3, kind: input, shape index: {}]   ;;  %s1521_s4 = inlined_call_operand.vmem [shape: f32[8,18,18], index: 4, kind: output, shape index: {}]  }
   0x1   :  { %11 = vsyncpa [#allocation3 + $0x1], 0  ;;  %s1287_s15 = smov 0   ;;  %s1289_s16 = smov 0  }
   0x2   :  { %s1291_s17 = smov 0   ;;  %s1293_s18 = smov 0  }
   0x3 LB: > { %s982_s19 = sadd.s32 4294967295, %s1255_s18   ;;  %s1307_s20 = sadd.s32 1, %s1255_s18   ;;  %s1255_s18 = sphi %s1293_s18, %s1530_s18   ;;  %s1251_s17 = sphi %s1291_s17, %s1529_s17   ;;  %s1247_s16 = sphi %s1289_s16, %s1528_s16   ;;  %s1243_s15 = sphi %s1287_s15, %s1527_s15  }
   0x4   : > { %s21_s21 = ssub.s32 %s1255_s18, %s1307_s20  ;;  %s24_s22 = sadd.s32 1, %s1251_s17 }
   0x5   : > { %p22_p0 = scmp.eq.s32.totalorder %s21_s21, 0  ;;  %p31_p1 = scmp.ne.s32.totalorder %s1251_s17, %s1247_s16 }
   0x6   : > { %p32_p2 = scmp.eq.s32.totalorder %s1255_s18, 0  ;;  %p37_p3 = scmp.ne.s32.totalorder %s1247_s16, %s1243_s15 }
   0x7   : > { %s1317_s23 = scalar_select %p22_p0, %s1251_s17, %s24_s22  }
   0x8   : > { %p33_p4 = por %p32_p2, %p31_p1  ;;  %p38_p5 = scmp.eq.s32.totalorder %s982_s19, 0 }
   0x9   : > { %p1156_p6 = scmp.lt.s32.totalorder %s1255_s18, 2  ;;  %s159_s25 = sand.u32 1, %s1251_s17  }
   0xa   : > { %p1322_p7 = por %p38_p5, %p37_p3  ;;  %s986_s26 = sshll.u32 %s159_s25, 6 }
   0xb   : > { %s1032_s27 = sshll.u32 %s1255_s18, 10  ;;  %s163_s5 = scalar_lea.vmem [#allocation2], %s986_s26 }
   0xc   : > { %s1523_s24 = scalar_select %p1322_p7, 1, 0 }
   0xd   : > { %s1331_s30 = scalar_lea.hbm %s1517_s0, %s1032_s27  ;;  %s171_s6 = sshll.u32 %s163_s5, 4  ;;  %s1333_s6 = int_to_ptr.vmem [resolvable:$true] %s171_s6 }
   0xe   : > { %p1335_p8 = pnand %p1156_p6, %p33_p4  ;;  %s1340_s8 = scalar_lea.sflag [#allocation3], %s159_s25 }
   0xf   : > { %s1193_s9 = scalar_lea.hbm %s1331_s30, 1024  ;;  %s1198_s12 = scalar_lea.hbm %s1517_s0, 2048 }
  0x10   : > { %p1194_p10 = scmp.ne.s32.totalorder %s1331_s30, %s1193_s9  ;;  %p1195_p11 = pneg %p1335_p8 }
  0x11   : > { %p1199_p0 = scmp.lt.s32.totalorder %s1331_s30, %s1517_s0  ;;  %p1200_p1 = scmp.lt.s32.totalorder %s1198_s12, %s1193_s9 }
  0x12   : > { %p1196_p12 = pnand %p1195_p11, %p1194_p10 }
  0x13   : > { %p1201_p2 = por %p1200_p1, %p1199_p0 }
  0x14   : > { %p1197_p13 = pneg %p1196_p12 }
  0x16   : > { %p1202_p3 = pnand %p1201_p2, %p1197_p13 }
  0x18   : > { %1205 = shalt.err (!%p1202_p3)
}
  0x19   : > { %s1206_s15 = scalar_lea.vmem %s1333_s6, 1024  ;;  %s1257_s21 = smov [#allocation2]  }
  0x1a   : > { %p1207_p4 = scmp.ne.s32.totalorder %s1333_s6, %s1206_s15  ;;  %s1211_s22 = sshll.u32 %s1257_s21, 4  ;;  %s1212_s22 = int_to_ptr.vmem [resolvable:$false] %s1211_s22 }
  0x1b   : > { %s1213_s25 = scalar_lea.vmem %s1212_s22, 2048  ;;  %p1214_p10 = scmp.lt.s32.totalorder %s1333_s6, %s1212_s22 }
  0x1c   : > { %p1209_p5 = pnand %p1207_p4, %p1195_p11  ;;  %p1215_p12 = scmp.lt.s32.totalorder %s1213_s25, %s1206_s15 }
  0x1e   : > { %p1210_p6 = pneg %p1209_p5  ;;  %p1216_p9 = por %p1215_p12, %p1214_p10 }
  0x20   : > { %p1217_p7 = pnand %p1216_p9, %p1210_p6 }
  0x22   : > { %1220 = shalt.err (!%p1217_p7)
}
  0x23   : > { %s1258_s26 = smov 128   ;;  %s1259_s27 = smov 8  }
  0x24   : > { %1155 = dma.hbm_to_vmem [thread:$0]  (!%p1335_p8), %s1331_s30, 1024, %s1333_s6, %s1340_s8, %s1258_s26, %s1258_s26, %s1259_s27  }
  0x25   : > { %p179_p11 = scmp.lt.s32.totalorder %s1255_s18, 3  ;;  %p1525_p13 = scmp.ge.s32.totalorder %s1255_s18, 1 }
  0x27   : > { %p180_p0 = pnand %p1525_p13, %p179_p11 }
  0x28   : > { %s185_s28 = sand.u32 (!%p180_p0), 1, %s1247_s16   ;;  %p1526_p7 = scmp.ne.s32.totalorder (!%p180_p0), %s1523_s24, 0 }
  0x29   : > { %183 = sbr.rel (%p180_p0) target bundleno = 661 (0x295), region = 36  ;;  %s991_s29 = sshll.u32 (!%p180_p0), %s185_s28, 6 }
  0x2a   : > { %s186_s5 = scalar_lea.sflag (!%p180_p0), [#allocation3], %s185_s28  ;;  %s1365_s9 = scalar_lea.vmem (!%p180_p0), [#allocation2], %s991_s29 }
  0x2e   : > { %1238 = dma.done.wait (%p1526_p7), %s186_s5, 1024  }
  0x2f   : > { %1240 = vsyncadd (%p1526_p7), %s186_s5, 4294966272  ;;  %v227_v0 = vld [vmem:[%s1519_s2 + $0x8] sm:$0xff]  ;;  %v226_v1 = vld [vmem:[%s1519_s2] sm:$0xff]  ;;  %vm233_vm0 = vcmask 130048   ;;  %v1260_v6 = vmov 0.0   ;;  %vm1261_vm1 = vmmov 0  }
  0x30   : > { %1069 = vmatprep.subr.mxu1 %v227_v0  ;;  %1089 = vmatprep.subr.mxu0 %v227_v0  ;;  %v231_v2 = vld [vmem:[%s1365_s9] sm:$0xff]  ;;  %v999_v3 = vld [vmem:[%s1365_s9 + $0x10] sm:$0xff]  ;;  %v232_v4 = vld [vmem:[%s1365_s9 + $0x8] sm:$0xff]  ;;  %s992_s15 = sshll.u32 %s982_s19, 2  ;;  %vm404_vm2 = vcmask 146432   ;;  %vm407_vm3 = vcmask 140288  }
  0x31   : > { %1070 = vmatpush3.msra.mxu1 %v227_v0  ;;  %1090 = vmatpush3.msra.mxu0 %v227_v0  ;;  %v1000_v5 = vld [vmem:[%s1365_s9 + $0x18] sm:$0xff]  ;;  %v1394_v9 = vld [vmem:[%s1518_s1] sm:$0xff]  ;;  %v1405_v12 = vld [vmem:[%s1518_s1 + $0x8] sm:$0xff]  ;;  %p217_p8 = scmp.lt.s32.totalorder %s992_s15, 7 }
  0x32   : > { %1071 = vmatprep.subr.mxu1 %v226_v1  ;;  %1091 = vmatprep.subr.mxu0 %v226_v1  ;;  %v1420_v13 = vld [vmem:[%s1518_s1 + $0x10] sm:$0x3]  ;;  %v1009_v14 = vld [vmem:[%s1365_s9 + $0x20] sm:$0xff]  ;;  %v1010_v16 = vld [vmem:[%s1365_s9 + $0x28] sm:$0xff] }
  0x33   : > { %1072 = vmatpush3.msra.mxu1 %v226_v1  ;;  %1073 = vmatprep.mubr.msk.f32.mxu1 %vm233_vm0, %v231_v2  ;;  %v1019_v15 = vld [vmem:[%s1365_s9 + $0x30] sm:$0xff]  ;;  %v1020_v17 = vld [vmem:[%s1365_s9 + $0x38] sm:$0xff]  ;;  %s1532_s15 = smov (!%p217_p8, %s992_s15), 7  ;;  %v228_v18 = vld [vmem:[%s1520_s3] sm:$0xff] }
  0x34   : > { %1092 = vmatpush3.msra.mxu0 %v226_v1  ;;  %1093 = vmatprep.mubr.msk.f32.mxu0 %vm233_vm0, %v999_v3  ;;  %s1149_s21 = smul.u32 24, %s1532_s15  ;;  %v229_v25 = vld [vmem:[%s1520_s3 + $0x8] sm:$0xff]  ;;  %v230_v32 = vld [vmem:[%s1520_s3 + $0x10] sm:$0x3] }
  0x35   : > { %1074 = vmatmul.mubr.msk.f32.vlgmr.msra.gmra.mxu1 %vm233_vm0, %v232_v4  ;;  %1094 = vmatmul.mubr.msk.f32.vlgmr.msra.gmra.mxu0 %vm233_vm0, %v1000_v5 }
  0x36   : > { %1076 = vmatprep.subr.mxu1 %v1260_v6  ;;  %1096 = vmatprep.subr.mxu0 %v1260_v6  ;;  %s1450_s28 = scalar_lea.vmem %s1521_s4, %s1149_s21 }
  0x37   : > { %1080 = vmatprep.mubr.msk.f32.mxu1 %vm1261_vm1, %v1260_v6  ;;  %1100 = vmatprep.mubr.msk.f32.mxu0 %vm1261_vm1, %v1260_v6 }
  0xf5   : > { %v1075_v7 = vpop.f32.mrf.mxu1  ;;  %v1095_v8 = vpop.f32.mrf.mxu0 }
  0xf6   : > { %1077 = vmatpush3.msra.mxu1 %v1075_v7  ;;  %1097 = vmatpush3.msra.mxu0 %v1095_v8 }
  0xf7   : > { %v306_v10 = vpop.f32.mrf.mxu1  ;;  %1078 = vmatprep.subr.mxu1 %v1260_v6  ;;  %v484_v11 = vpop.f32.mrf.mxu0  ;;  %1098 = vmatprep.subr.mxu0 %v1260_v6 }
  0xf8   : > { %1079 = vmatpush3.msra.mxu1 %v306_v10  ;;  %1099 = vmatpush3.msra.mxu0 %v484_v11 }
  0xf9   : > { %1081 = vmatmul.mubr.msk.f32.vlgmr.msra.gmra.mxu1 %vm233_vm0, %v1394_v9  ;;  %1101 = vmatmul.mubr.msk.f32.vlgmr.msra.gmra.mxu0 %vm233_vm0, %v1394_v9 }
  0xfa   : > { %1109 = vmatprep.subr.mxu1 %v227_v0  ;;  %1129 = vmatprep.subr.mxu0 %v227_v0 }
  0xfb   : > { %1110 = vmatpush3.msra.mxu1 %v227_v0  ;;  %1130 = vmatpush3.msra.mxu0 %v227_v0 }
  0xfc   : > { %1083 = vmatprep.mubr.msk.f32.mxu1 %vm1261_vm1, %v1260_v6  ;;  %1103 = vmatprep.mubr.msk.f32.mxu0 %vm1261_vm1, %v1260_v6 }
  0xfd   : > { %1084 = vmatmul.mubr.msk.f32.gmra.mxu1 %vm233_vm0, %v1405_v12  ;;  %1104 = vmatmul.mubr.msk.f32.gmra.mxu0 %vm233_vm0, %v1405_v12 }
  0xfe   : > { %1111 = vmatprep.subr.mxu1 %v226_v1  ;;  %1086 = vmatprep.mubr.msk.f32.mxu1 %vm1261_vm1, %v1260_v6 }
  0xff   : > { %1106 = vmatprep.mubr.msk.f32.mxu0 %vm1261_vm1, %v1260_v6  ;;  %1112 = vmatpush3.msra.mxu1 %v226_v1 }
 0x100   : > { %1131 = vmatprep.subr.mxu0 %v226_v1  ;;  %1116 = vmatprep.subr.mxu1 %v1260_v6 }
 0x101   : > { %1087 = vmatmul.mubr.msk.f32.gmra.mxu1 %vm233_vm0, %v1420_v13  ;;  %1107 = vmatmul.mubr.msk.f32.gmra.mxu0 %vm233_vm0, %v1420_v13 }
 0x102   : > { %1132 = vmatpush3.msra.mxu0 %v226_v1  ;;  %1113 = vmatprep.mubr.msk.f32.mxu1 %vm233_vm0, %v1009_v14 }
 0x103   : > { %1133 = vmatprep.mubr.msk.f32.mxu0 %vm233_vm0, %v1019_v15  ;;  %1136 = vmatprep.subr.mxu0 %v1260_v6 }
 0x105   : > { %1114 = vmatmul.mubr.msk.f32.vlgmr.msra.gmra.mxu1 %vm233_vm0, %v1010_v16  ;;  %1134 = vmatmul.mubr.msk.f32.vlgmr.msra.gmra.mxu0 %vm233_vm0, %v1020_v17 }
 0x106   : > { %1120 = vmatprep.mubr.msk.f32.mxu1 %vm1261_vm1, %v1260_v6  ;;  %1140 = vmatprep.mubr.msk.f32.mxu0 %vm1261_vm1, %v1260_v6 }
 0x1b9   : > { %v390_v19 = vpop.f32.mrf.mxu1  ;;  %v559_v20 = vpop.f32.mrf.mxu0 }
 0x1ba   : > { %v391_v21 = vadd.f32 %v390_v19, %v228_v18  ;;  %v560_v22 = vadd.f32 %v559_v20, %v228_v18 }
 0x1bb   : > { %v1082_v23 = vpop.f32.mrf.mxu1  ;;  %v1102_v24 = vpop.f32.mrf.mxu0 }
 0x1bc   : > { %405 = vst.msk [vmem:[%s1450_s28] sm:$0xff] %vm404_vm2, %v391_v21  ;;  %1006 = vst.msk [vmem:[%s1450_s28 + $0x18] sm:$0xff] %vm404_vm2, %v560_v22 }
 0x1bd   : > { %v395_v26 = vpop.f32.mrf.mxu1  ;;  %v564_v27 = vpop.f32.mrf.mxu0 }
 0x1be   : > { %v396_v28 = vadd.f32 %v395_v26, %v229_v25  ;;  %v565_v29 = vadd.f32 %v564_v27, %v229_v25 }
 0x1bf   : > { %v1085_v30 = vpop.f32.mrf.mxu1  ;;  %v1105_v31 = vpop.f32.mrf.mxu0 }
 0x1c0   : > { %406 = vst.msk [vmem:[%s1450_s28 + $0x8] sm:$0xff] %vm404_vm2, %v396_v28  ;;  %1007 = vst.msk [vmem:[%s1450_s28 + $0x20] sm:$0xff] %vm404_vm2, %v565_v29 }
 0x1c1   : > { %v400_v33 = vpop.f32.mrf.mxu1  ;;  %v569_v34 = vpop.f32.mrf.mxu0 }
 0x1c2   : > { %v401_v35 = vadd.f32 %v400_v33, %v230_v32  ;;  %v570_v36 = vadd.f32 %v569_v34, %v230_v32 }
 0x1c3   : > { %v1088_v37 = vpop.f32.mrf.mxu1  ;;  %v1108_v38 = vpop.f32.mrf.mxu0 }
 0x1c4   : > { %408 = vst.msk [vmem:[%s1450_s28 + $0x10] sm:$0x3] %vm407_vm3, %v401_v35  ;;  %1008 = vst.msk [vmem:[%s1450_s28 + $0x28] sm:$0x3] %vm407_vm3, %v570_v36 }
 0x1c5   : > { %v1115_v39 = vpop.f32.mrf.mxu1  ;;  %v1135_v40 = vpop.f32.mrf.mxu0 }
 0x1c6   : > { %1117 = vmatpush3.msra.mxu1 %v1115_v39  ;;  %1137 = vmatpush3.msra.mxu0 %v1135_v40 }
 0x1c7   : > { %v652_v41 = vpop.f32.mrf.mxu1  ;;  %1118 = vmatprep.subr.mxu1 %v1260_v6  ;;  %v820_v42 = vpop.f32.mrf.mxu0  ;;  %1138 = vmatprep.subr.mxu0 %v1260_v6 }
 0x1c8   : > { %1119 = vmatpush3.msra.mxu1 %v652_v41  ;;  %1139 = vmatpush3.msra.mxu0 %v820_v42 }
 0x1c9   : > { %1121 = vmatmul.mubr.msk.f32.vlgmr.msra.gmra.mxu1 %vm233_vm0, %v1394_v9  ;;  %1141 = vmatmul.mubr.msk.f32.vlgmr.msra.gmra.mxu0 %vm233_vm0, %v1394_v9 }
 0x1ca   : > { %1123 = vmatprep.mubr.msk.f32.mxu1 %vm1261_vm1, %v1260_v6  ;;  %1143 = vmatprep.mubr.msk.f32.mxu0 %vm1261_vm1, %v1260_v6 }
 0x1cd   : > { %1124 = vmatmul.mubr.msk.f32.gmra.mxu1 %vm233_vm0, %v1405_v12  ;;  %1144 = vmatmul.mubr.msk.f32.gmra.mxu0 %vm233_vm0, %v1405_v12 }
 0x1ce   : > { %1126 = vmatprep.mubr.msk.f32.mxu1 %vm1261_vm1, %v1260_v6  ;;  %1146 = vmatprep.mubr.msk.f32.mxu0 %vm1261_vm1, %v1260_v6 }
 0x1d1   : > { %1127 = vmatmul.mubr.msk.f32.gmra.mxu1 %vm233_vm0, %v1420_v13  ;;  %1147 = vmatmul.mubr.msk.f32.gmra.mxu0 %vm233_vm0, %v1420_v13 }
 0x289   : > { %v727_v43 = vpop.f32.mrf.mxu1  ;;  %v895_v44 = vpop.f32.mrf.mxu0 }
 0x28a   : > { %v728_v45 = vadd.f32 %v727_v43, %v228_v18  ;;  %v896_v46 = vadd.f32 %v895_v44, %v228_v18 }
 0x28b   : > { %v1122_v47 = vpop.f32.mrf.mxu1  ;;  %v1142_v48 = vpop.f32.mrf.mxu0 }
 0x28c   : > { %1016 = vst.msk [vmem:[%s1450_s28 + $0x30] sm:$0xff] %vm404_vm2, %v728_v45  ;;  %1026 = vst.msk [vmem:[%s1450_s28 + $0x48] sm:$0xff] %vm404_vm2, %v896_v46 }
 0x28d   : > { %v732_v49 = vpop.f32.mrf.mxu1  ;;  %v900_v50 = vpop.f32.mrf.mxu0 }
 0x28e   : > { %v733_v51 = vadd.f32 %v732_v49, %v229_v25  ;;  %v901_v52 = vadd.f32 %v900_v50, %v229_v25 }
 0x28f   : > { %v1125_v53 = vpop.f32.mrf.mxu1  ;;  %v1145_v54 = vpop.f32.mrf.mxu0 }
 0x290   : > { %1017 = vst.msk [vmem:[%s1450_s28 + $0x38] sm:$0xff] %vm404_vm2, %v733_v51  ;;  %1027 = vst.msk [vmem:[%s1450_s28 + $0x50] sm:$0xff] %vm404_vm2, %v901_v52 }
 0x291   : > { %v737_v55 = vpop.f32.mrf.mxu1  ;;  %v905_v56 = vpop.f32.mrf.mxu0 }
 0x292   : > { %v738_v57 = vadd.f32 %v737_v55, %v230_v32  ;;  %v906_v58 = vadd.f32 %v905_v56, %v230_v32 }
 0x293   : > { %v1128_v59 = vpop.f32.mrf.mxu1  ;;  %v1148_v60 = vpop.f32.mrf.mxu0 }
 0x294   : > { %1018 = vst.msk [vmem:[%s1450_s28 + $0x40] sm:$0x3] %vm407_vm3, %v738_v57  ;;  %1028 = vst.msk [vmem:[%s1450_s28 + $0x58] sm:$0x3] %vm407_vm3, %v906_v58 }
 0x295 PF: > { %p14_p9 = scmp.ge.s32.totalorder %s1307_s20, 4   ;;  %s1527_s15 = smov %s1247_s16 }
 0x296   : > { %s1528_s16 = smov %s1251_s17  ;;  %s1529_s17 = smov %s1317_s23 }
 0x297   : > { %s1530_s18 = smov %s1307_s20  ;;  %16 = sbr.rel (!%p14_p9) target bundleno = 3 (0x3), region = 82 }
 0x29c   :  { %937 = vsyncpa [#allocation3], 1 }
 0x29d   :  { %939 = vsyncpa [#allocation3 + $0x1], 1 }

</bundles_post_ra>
